<compile_context>
chip_gen: v7x
topology: tpu7x:2x2x1
jax: 0.10.0
libtpu: 0.0.40
codegen_flags: <defaults>
</compile_context>

<pallas_src>
import jax
import jax.numpy as jnp
from jax.experimental import pallas as pl
from jax.experimental.pallas import tpu as pltpu


def _round_up(a: int, b: int) -> int:
    return ((a + b - 1) // b) * b


def _switch_selection_kernel(x_ref, w_ref, b_ref, out_ref, acc_ref):
    # x_ref  : (TB, TS, D)  input tile (any float dtype; upcast to f32)
    # w_ref  : (D, 2)       weight already transposed AND pre-scaled by 1/S
    # b_ref  : (1, 2)       lin_bias + switch_bias, pre-folded
    # out_ref: (TB, 2)      softmaxed selection weights
    # acc_ref: (TB, D) f32  running sum over the S axis
    k = pl.program_id(1)

    @pl.when(k == 0)
    def _():
        acc_ref[...] = jnp.zeros_like(acc_ref)

    x = x_ref[...].astype(jnp.float32)            # (TB, TS, D)
    acc_ref[...] += jnp.sum(x, axis=1)            # (TB, D)

    @pl.when(k == pl.num_programs(1) - 1)
    def _():
        # mean is already folded into w (scaled by 1/S); biases pre-merged.
        scores = jnp.dot(acc_ref[...], w_ref[...],
                         preferred_element_type=jnp.float32) + b_ref[...]
        m = jnp.max(scores, axis=-1, keepdims=True)
        e = jnp.exp(scores - m)
        denom = jnp.sum(e, axis=-1, keepdims=True)
        out_ref[...] = (e / denom).astype(out_ref.dtype)


def switch_selection_layer(x, weight, lin_bias, switch_bias,
                           *, max_tb=64, target_tile_bytes=4 * 1024 * 1024):
    """x: (B, S1, S2, D); weight: (out=2, D) [PyTorch layout]; biases: (2,)."""
    B, S1, S2, D = x.shape
    out_dim = weight.shape[0]
    S = S1 * S2
    x_flat = x.reshape(B, S, D)                    # glue reshape in plain JAX

    # --- tile sizing (sublane-aligned, <= ~4 MiB per x block) -------------
    TB = min(max_tb, _round_up(B, 8))
    B_pad = _round_up(B, TB)

    itemsize = jnp.dtype(x_flat.dtype).itemsize
    ts_cap = max(8, (target_tile_bytes // (TB * D * itemsize)) // 8 * 8)
    TS = min(ts_cap, _round_up(S, 8))
    S_pad = _round_up(S, TS)

    if (B_pad, S_pad) != (B, S):
        # zero padding: padded S rows add nothing to the sum; padded B rows
        # are sliced off below.
        x_flat = jnp.pad(x_flat, ((0, B_pad - B), (0, S_pad - S), (0, 0)))

    # --- host-side folding: mean and both biases into the linear ----------
    w_scaled = (weight.T.astype(jnp.float32)) * (1.0 / S)                # (D, 2)
    bias = (lin_bias.astype(jnp.float32)
            + switch_bias.astype(jnp.float32)).reshape(1, out_dim)       # (1, 2)

    grid = (B_pad // TB, S_pad // TS)

    out = pl.pallas_call(
        _switch_selection_kernel,
        out_shape=jax.ShapeDtypeStruct((B_pad, out_dim), jnp.float32),
        grid_spec=pltpu.PrefetchScalarGridSpec(
            num_scalar_prefetch=0,
            grid=grid,
            in_specs=[
                pl.BlockSpec((TB, TS, D), lambda i, k: (i, k, 0)),
                pl.BlockSpec((D, out_dim), lambda i, k: (0, 0)),   # stays resident
                pl.BlockSpec((1, out_dim), lambda i, k: (0, 0)),   # stays resident
            ],
            out_specs=pl.BlockSpec((TB, out_dim), lambda i, k: (i, 0)),
            scratch_shapes=[pltpu.VMEM((TB, D), jnp.float32)],
        ),
        compiler_params=pltpu.CompilerParams(
            dimension_semantics=("parallel", "arbitrary")),
    )(x_flat, w_scaled, bias)

    return out[:B]


if __name__ == "__main__":
    key = jax.random.PRNGKey(0)
    B, S1, S2, D = 2, 8, 8, 32
    out_dim = 2

    kx, kw, kb = jax.random.split(key, 3)
    x = jax.random.normal(kx, (B, S1, S2, D), dtype=jnp.float32)

    # Deterministic param init mimicking nn.Linear defaults (uniform +-1/sqrt(D)).
    bound = 1.0 / jnp.sqrt(jnp.float32(D))
    weight = jax.random.uniform(kw, (out_dim, D), minval=-bound, maxval=bound,
                                dtype=jnp.float32)
    lin_bias = jax.random.uniform(kb, (out_dim,), minval=-bound, maxval=bound,
                                  dtype=jnp.float32)
    switch_bias = jnp.array([1.0, 0.0], dtype=jnp.float32)   # self.bias init

    out = switch_selection_layer(x, weight, lin_bias, switch_bias)
    out = jax.block_until_ready(out)

    # Pure-JAX reference check.
    x_mean = x.mean(axis=(1, 2))
    ref = jax.nn.softmax(x_mean @ weight.T + lin_bias + switch_bias, axis=-1)
    assert jnp.allclose(out, ref, atol=1e-5, rtol=1e-5), (out, ref)

    print("KERNEL_OK")
</pallas_src>

<mosaic_0001>
module attributes {stable_mosaic.version = 11 : i64} {
  func.func @_switch_selection_kernel(%arg0: i32, %arg1: i32, %arg2: memref<8x64x32xf32, #tpu.memory_space<vmem>>, %arg3: memref<32x2xf32, #tpu.memory_space<vmem>>, %arg4: memref<1x2xf32, #tpu.memory_space<vmem>>, %arg5: memref<8x2xf32, #tpu.memory_space<vmem>>, %arg6: memref<8x32xf32, #tpu.memory_space<vmem>>) attributes {dimension_semantics = [#tpu.dimension_semantics<parallel>, #tpu.dimension_semantics<arbitrary>], iteration_bounds = array<i64: 1, 1>, scalar_prefetch = 0 : i64, scratch_operands = 1 : i64, tpu.core_type = #tpu.core_type<tc>, window_params = [{transform_indices = @transform_0, window_bounds = array<i64: 8, 64, 32>}, {pipeline_mode = #tpu.pipeline_mode<synchronous>, transform_indices = @transform_1, window_bounds = array<i64: 32, 2>}, {pipeline_mode = #tpu.pipeline_mode<synchronous>, transform_indices = @transform_2, window_bounds = array<i64: 1, 2>}, {transform_indices = @transform_3, window_bounds = array<i64: 8, 2>}]} {
    %c0_i32 = arith.constant 0 : i32
    %0 = arith.cmpi eq, %arg1, %c0_i32 : i32
    %1 = arith.extui %0 : i1 to i32
    %c0_i32_0 = arith.constant 0 : i32
    %2 = arith.cmpi ne, %1, %c0_i32_0 : i32
    scf.if %2 {
      %cst_9 = arith.constant 0.000000e+00 : f32
      %11 = vector.broadcast %cst_9 : f32 to vector<8x32xf32>
      %c0_10 = arith.constant 0 : index
      %c0_11 = arith.constant 0 : index
      %12 = vector.load %arg6[%c0_10, %c0_11] : memref<8x32xf32, #tpu.memory_space<vmem>>, vector<8x32xf32>
      tpu.vector_store %arg6[%c0_10, %c0_11], %11 {strides = array<i32>} : memref<8x32xf32, #tpu.memory_space<vmem>>, vector<8x32xf32>,
    } else {
    }
    %c0 = arith.constant 0 : index
    %c0_1 = arith.constant 0 : index
    %c0_2 = arith.constant 0 : index
    %3 = vector.load %arg2[%c0, %c0_1, %c0_2] : memref<8x64x32xf32, #tpu.memory_space<vmem>>, vector<8x64x32xf32>
    %c0_3 = arith.constant 0 : index
    %c0_4 = arith.constant 0 : index
    %4 = vector.load %arg6[%c0_3, %c0_4] : memref<8x32xf32, #tpu.memory_space<vmem>>, vector<8x32xf32>
    %cst = arith.constant dense<0.000000e+00> : vector<8x32xf32>
    %5 = vector.multi_reduction <add>, %3, %cst [1] : vector<8x64x32xf32> to vector<8x32xf32>
    %6 = arith.addf %4, %5 : vector<8x32xf32>
    %c0_5 = arith.constant 0 : index
    %c0_6 = arith.constant 0 : index
    %7 = vector.load %arg6[%c0_5, %c0_6] : memref<8x32xf32, #tpu.memory_space<vmem>>, vector<8x32xf32>
    tpu.vector_store %arg6[%c0_5, %c0_6], %6 {strides = array<i32>} : memref<8x32xf32, #tpu.memory_space<vmem>>, vector<8x32xf32>,
    %c0_i32_7 = arith.constant 0 : i32
    %8 = arith.cmpi eq, %arg1, %c0_i32_7 : i32
    %9 = arith.extui %8 : i1 to i32
    %c0_i32_8 = arith.constant 0 : i32
    %10 = arith.cmpi ne, %9, %c0_i32_8 : i32
    scf.if %10 {
      %c0_9 = arith.constant 0 : index
      %c0_10 = arith.constant 0 : index
      %11 = vector.load %arg6[%c0_9, %c0_10] : memref<8x32xf32, #tpu.memory_space<vmem>>, vector<8x32xf32>
      %c0_11 = arith.constant 0 : index
      %c0_12 = arith.constant 0 : index
      %12 = vector.load %arg3[%c0_11, %c0_12] : memref<32x2xf32, #tpu.memory_space<vmem>>, vector<32x2xf32>
      %cst_13 = arith.constant dense<0.000000e+00> : vector<8x2xf32>
      %13 = tpu.matmul %11, %12, %cst_13 {dimension_numbers = #tpu.dot_dimension_numbers<[1], [0], [0], [1], [0, 0, 1, 1], [], []>} : vector<8x32xf32>, vector<32x2xf32>, vector<8x2xf32> -> vector<8x2xf32>
      %c0_14 = arith.constant 0 : index
      %c0_15 = arith.constant 0 : index
      %14 = vector.load %arg4[%c0_14, %c0_15] : memref<1x2xf32, #tpu.memory_space<vmem>>, vector<1x2xf32>
      %15 = vector.broadcast %14 : vector<1x2xf32> to vector<8x2xf32>
      %16 = arith.addf %13, %15 : vector<8x2xf32>
      %cst_16 = arith.constant dense<0xFF800000> : vector<8xf32>
      %17 = vector.multi_reduction <maximumf>, %16, %cst_16 [1] : vector<8x2xf32> to vector<8xf32>
      %18 = vector.shape_cast %17 : vector<8xf32> to vector<8x1xf32>
      %19 = vector.broadcast %18 : vector<8x1xf32> to vector<8x2xf32>
      %20 = arith.subf %16, %19 : vector<8x2xf32>
      %21 = math.exp %20 : vector<8x2xf32>
      %cst_17 = arith.constant dense<0.000000e+00> : vector<8xf32>
      %22 = vector.multi_reduction <add>, %21, %cst_17 [1] : vector<8x2xf32> to vector<8xf32>
      %23 = vector.shape_cast %22 : vector<8xf32> to vector<8x1xf32>
      %24 = vector.broadcast %23 : vector<8x1xf32> to vector<8x2xf32>
      %25 = arith.divf %21, %24 : vector<8x2xf32>
      %c0_18 = arith.constant 0 : index
      %c0_19 = arith.constant 0 : index
      %26 = vector.load %arg5[%c0_18, %c0_19] : memref<8x2xf32, #tpu.memory_space<vmem>>, vector<8x2xf32>
      tpu.vector_store %arg5[%c0_18, %c0_19], %25 {strides = array<i32>} : memref<8x2xf32, #tpu.memory_space<vmem>>, vector<8x2xf32>,
    } else {
    }
    return
  }
  func.func @transform_0(%arg0: i32, %arg1: i32) -> (i32, i32, i32) {
    %c0_i32 = arith.constant 0 : i32
    %c0_i32_0 = arith.constant 0 : i32
    return %arg0, %arg1, %c0_i32 : i32, i32, i32
  }
  func.func @transform_1(%arg0: i32, %arg1: i32) -> (i32, i32) {
    %c0_i32 = arith.constant 0 : i32
    %c0_i32_0 = arith.constant 0 : i32
    %c0_i32_1 = arith.constant 0 : i32
    return %c0_i32, %c0_i32_0 : i32, i32
  }
  func.func @transform_2(%arg0: i32, %arg1: i32) -> (i32, i32) {
    %c0_i32 = arith.constant 0 : i32
    %c0_i32_0 = arith.constant 0 : i32
    %c0_i32_1 = arith.constant 0 : i32
    return %c0_i32, %c0_i32_0 : i32, i32
  }
  func.func @transform_3(%arg0: i32, %arg1: i32) -> (i32, i32) {
    %c0_i32 = arith.constant 0 : i32
    %c0_i32_0 = arith.constant 0 : i32
    return %arg0, %c0_i32 : i32, i32
  }
}

</mosaic_0001>

<bundles_post_ra>
// kernel: tpu_custom_call.1
= control target key start
LH: loop header
LB: loop body
LE: loop exit
PB: predicated region body
PF: predicated region fallthrough
CT: control target
= control target key end

     0   :  { %vm18_vm0 = vcmask 261120   ;;  %v415_v0 = vmov 0.0|0.0   ;;  %v416_v4 = vmov 0.0   ;;  %vm417_vm1 = vmmov 0   ;;  %s718_s1 = inlined_call_operand.vmem [shape: f32[32,2], index: 1, kind: input, shape index: {}]   ;;  %s719_s0 = inlined_call_operand.vmem [shape: f32[8,64,32], index: 0, kind: input, shape index: {}]   ;;  %s720_s2 = inlined_call_operand.vmem [shape: f32[1,2], index: 2, kind: input, shape index: {}]   ;;  %s721_s3 = inlined_call_operand.vmem [shape: f32[8,2], index: 3, kind: output, shape index: {}]  }
   0x1   :  { %402 = vmatprep.subr.bf16.mxu0 %v415_v0  ;;  %v283_v1 = vld [vmem:[%s718_s1] sm:$0xff]  ;;  %v284_v2 = vld [vmem:[%s718_s1 + $0x8] sm:$0xff]  ;;  %v285_v3 = vld [vmem:[%s718_s1 + $0x10] sm:$0xff]  ;;  %19 = vst.msk [vmem:[#allocation2] sm:$0xff] %vm18_vm0, %v416_v4  ;;  %399 = vmatprep.mubr.msk.f32.mxu0 %vm417_vm1, %v416_v4  ;;  %vm262_vm2 = vcmask 1041409   ;;  %vm264_vm3 = vcmask 1042434  }
   0x2   :  { %v403_v5 = vpack.c.bf16 %v284_v2, %v283_v1  ;;  %v286_v6 = vld [vmem:[%s718_s1 + $0x18] sm:$0xff]  ;;  %v20_v7 = vld [vmem:[%s719_s0] sm:$0xff]  ;;  %v21_v8 = vld [vmem:[%s719_s0 + $0x8] sm:$0xff]  ;;  %vm266_vm4 = vcmask 1043459   ;;  %vm268_vm5 = vcmask 1044484   ;;  %vm270_vm6 = vcmask 1045509  }
   0x3   :  { %v22_v9 = vld [vmem:[%s719_s0 + $0x10] sm:$0xff]  ;;  %v23_v10 = vld [vmem:[%s719_s0 + $0x18] sm:$0xff]  ;;  %v24_v11 = vld [vmem:[%s719_s0 + $0x20] sm:$0xff]  ;;  %v86_v12 = vsel %vm18_vm0, %v20_v7, 0.0  ;;  %v87_v13 = vsel %vm18_vm0, %v21_v8, 0.0  ;;  %v406_v14 = vpack.c.bf16 %v286_v6, %v285_v3  ;;  %vm272_vm7 = vcmask 1046534  }
   0x4   :  { %404 = vmatpush3.bf16.msra.mxu0 %v403_v5  ;;  %v25_v15 = vld [vmem:[%s719_s0 + $0x28] sm:$0xff]  ;;  %v26_v16 = vld [vmem:[%s719_s0 + $0x30] sm:$0xff]  ;;  %v27_v17 = vld [vmem:[%s719_s0 + $0x38] sm:$0xff]  ;;  %v88_v18 = vadd.f32 %v87_v13, %v86_v12  ;;  %v89_v19 = vsel %vm18_vm0, %v22_v9, 0.0  ;;  %v91_v23 = vsel %vm18_vm0, %v23_v10, 0.0  ;;  %v93_v24 = vsel %vm18_vm0, %v24_v11, 0.0 }
   0x5   :  { %405 = vmatprep.subr.bf16.mxu0 %v415_v0  ;;  %v28_v20 = vld [vmem:[%s719_s0 + $0x40] sm:$0xff]  ;;  %v29_v21 = vld [vmem:[%s719_s0 + $0x48] sm:$0xff]  ;;  %v30_v22 = vld [vmem:[%s719_s0 + $0x50] sm:$0xff]  ;;  %v95_v35 = vsel %vm18_vm0, %v25_v15, 0.0  ;;  %v97_v36 = vsel %vm18_vm0, %v26_v16, 0.0  ;;  %v99_v37 = vsel %vm18_vm0, %v27_v17, 0.0 }
   0x6   :  { %v31_v25 = vld [vmem:[%s719_s0 + $0x58] sm:$0xff]  ;;  %v32_v26 = vld [vmem:[%s719_s0 + $0x60] sm:$0xff]  ;;  %v33_v27 = vld [vmem:[%s719_s0 + $0x68] sm:$0xff]  ;;  %v90_v28 = vadd.f32 %v89_v19, %v88_v18  ;;  %v107_v29 = vsel %vm18_vm0, %v28_v20, 0.0  ;;  %v108_v30 = vsel %vm18_vm0, %v29_v21, 0.0  ;;  %v110_v31 = vsel %vm18_vm0, %v30_v22, 0.0 }
   0x7   :  { %v34_v32 = vld [vmem:[%s719_s0 + $0x70] sm:$0xff]  ;;  %v35_v33 = vld [vmem:[%s719_s0 + $0x78] sm:$0xff]  ;;  %v36_v34 = vld [vmem:[%s719_s0 + $0x80] sm:$0xff]  ;;  %v109_v38 = vadd.f32 %v108_v30, %v107_v29  ;;  %v112_v43 = vsel %vm18_vm0, %v31_v25, 0.0  ;;  %v114_v44 = vsel %vm18_vm0, %v32_v26, 0.0  ;;  %v116_v49 = vsel %vm18_vm0, %v33_v27, 0.0 }
   0x8   :  { %407 = vmatpush3.bf16.msra.mxu0 %v406_v14  ;;  %v37_v39 = vld [vmem:[%s719_s0 + $0x88] sm:$0xff]  ;;  %v38_v40 = vld [vmem:[%s719_s0 + $0x90] sm:$0xff]  ;;  %v39_v41 = vld [vmem:[%s719_s0 + $0x98] sm:$0xff]  ;;  %v92_v42 = vadd.f32 %v91_v23, %v90_v28  ;;  %v128_v45 = vsel %vm18_vm0, %v36_v34, 0.0  ;;  %v118_v56 = vsel %vm18_vm0, %v34_v32, 0.0  ;;  %v120_v57 = vsel %vm18_vm0, %v35_v33, 0.0 }
   0x9   :  { %v40_v46 = vld [vmem:[%s719_s0 + $0xa0] sm:$0xff]  ;;  %v41_v47 = vld [vmem:[%s719_s0 + $0xa8] sm:$0xff]  ;;  %v111_v48 = vadd.f32 %v110_v31, %v109_v38  ;;  %v129_v50 = vsel %vm18_vm0, %v37_v39, 0.0  ;;  %v131_v51 = vsel %vm18_vm0, %v38_v40, 0.0  ;;  %v42_v52 = vld [vmem:[%s719_s0 + $0xb0] sm:$0xff]  ;;  %v133_v63 = vsel %vm18_vm0, %v39_v41, 0.0 }
   0xa   :  { %v44_v53 = vld [vmem:[%s719_s0 + $0xc0] sm:$0xff]  ;;  %v45_v54 = vld [vmem:[%s719_s0 + $0xc8] sm:$0xff]  ;;  %v94_v55 = vadd.f32 %v93_v24, %v92_v42  ;;  %v130_v58 = vadd.f32 %v129_v50, %v128_v45  ;;  %v43_v59 = vld [vmem:[%s719_s0 + $0xb8] sm:$0xff]  ;;  %v135_v0 = vsel %vm18_vm0, %v40_v46, 0.0  ;;  %v137_v11 = vsel %vm18_vm0, %v41_v47, 0.0 }
   0xb   :  { %v46_v60 = vld [vmem:[%s719_s0 + $0xd0] sm:$0xff]  ;;  %v47_v61 = vld [vmem:[%s719_s0 + $0xd8] sm:$0xff]  ;;  %v113_v62 = vadd.f32 %v112_v43, %v111_v48  ;;  %v149_v1 = vsel %vm18_vm0, %v44_v53, 0.0  ;;  %v48_v2 = vld [vmem:[%s719_s0 + $0xe0] sm:$0xff]  ;;  %v150_v5 = vsel %vm18_vm0, %v45_v54, 0.0  ;;  %v139_v12 = vsel %vm18_vm0, %v42_v52, 0.0 }
   0xc   :  { %v96_v3 = vadd.f32 %v95_v35, %v94_v55  ;;  %v132_v4 = vadd.f32 %v131_v51, %v130_v58  ;;  %v152_v6 = vsel %vm18_vm0, %v46_v60, 0.0  ;;  %v52_v7 = vld [vmem:[%s719_s0 + $0x100] sm:$0xff]  ;;  %v53_v8 = vld [vmem:[%s719_s0 + $0x108] sm:$0xff]  ;;  %v54_v9 = vld [vmem:[%s719_s0 + $0x110] sm:$0xff]  ;;  %v151_v13 = vadd.f32 %v150_v5, %v149_v1 }
   0xd   :  { %v115_v10 = vadd.f32 %v114_v44, %v113_v62  ;;  %v49_v14 = vld [vmem:[%s719_s0 + $0xe8] sm:$0xff]  ;;  %v141_v17 = vsel %vm18_vm0, %v43_v59, 0.0  ;;  %v154_v18 = vsel %vm18_vm0, %v47_v61, 0.0  ;;  %v50_v19 = vld [vmem:[%s719_s0 + $0xf0] sm:$0xff]  ;;  %v55_v20 = vld [vmem:[%s719_s0 + $0x118] sm:$0xff]  ;;  %v156_v23 = vsel %vm18_vm0, %v48_v2, 0.0 }
   0xe   :  { %v98_v15 = vadd.f32 %v97_v36, %v96_v3  ;;  %v134_v16 = vadd.f32 %v133_v63, %v132_v4  ;;  %v153_v22 = vadd.f32 %v152_v6, %v151_v13  ;;  %v170_v24 = vsel %vm18_vm0, %v52_v7, 0.0  ;;  %v51_v25 = vld [vmem:[%s719_s0 + $0xf8] sm:$0xff]  ;;  %v56_v30 = vld [vmem:[%s719_s0 + $0x120] sm:$0xff]  ;;  %v61_v36 = vld [vmem:[%s719_s0 + $0x148] sm:$0xff] }
   0xf   :  { %v117_v21 = vadd.f32 %v116_v49, %v115_v10  ;;  %v171_v28 = vsel %vm18_vm0, %v53_v8, 0.0  ;;  %v173_v29 = vsel %vm18_vm0, %v54_v9, 0.0  ;;  %v60_v31 = vld [vmem:[%s719_s0 + $0x140] sm:$0xff]  ;;  %v158_v34 = vsel %vm18_vm0, %v49_v14, 0.0  ;;  %v57_v41 = vld [vmem:[%s719_s0 + $0x128] sm:$0xff]  ;;  %v62_v42 = vld [vmem:[%s719_s0 + $0x150] sm:$0xff] }
  0x10   :  { %v100_v26 = vadd.f32 %v99_v37, %v98_v15  ;;  %v136_v27 = vadd.f32 %v135_v0, %v134_v16  ;;  %v155_v33 = vadd.f32 %v154_v18, %v153_v22  ;;  %v172_v35 = vadd.f32 %v171_v28, %v170_v24  ;;  %v63_v47 = vld [vmem:[%s719_s0 + $0x158] sm:$0xff]  ;;  %v58_v52 = vld [vmem:[%s719_s0 + $0x130] sm:$0xff]  ;;  %v65_v3 = vld [vmem:[%s719_s0 + $0x168] sm:$0xff] }
  0x11   :  { %v119_v32 = vadd.f32 %v118_v56, %v117_v21  ;;  %v160_v39 = vsel %vm18_vm0, %v50_v19, 0.0  ;;  %v175_v40 = vsel %vm18_vm0, %v55_v20, 0.0  ;;  %v162_v45 = vsel %vm18_vm0, %v51_v25, 0.0  ;;  %v59_v62 = vld [vmem:[%s719_s0 + $0x138] sm:$0xff]  ;;  %v68_v8 = vld [vmem:[%s719_s0 + $0x180] sm:$0xff]  ;;  %v66_v13 = vld [vmem:[%s719_s0 + $0x170] sm:$0xff] }
  0x12   :  { %v101_v37 = vrot.slane %v100_v26, 4  ;;  %v138_v38 = vadd.f32 %v137_v11, %v136_v27  ;;  %v157_v44 = vadd.f32 %v156_v23, %v155_v33  ;;  %v174_v46 = vadd.f32 %v173_v29, %v172_v35  ;;  %v69_v14 = vld [vmem:[%s719_s0 + $0x188] sm:$0xff]  ;;  %v67_v22 = vld [vmem:[%s719_s0 + $0x178] sm:$0xff] }
  0x13   :  { %v121_v43 = vadd.f32 %v120_v57, %v119_v32  ;;  %v177_v50 = vsel %vm18_vm0, %v56_v30, 0.0  ;;  %v191_v51 = vsel %vm18_vm0, %v60_v31, 0.0  ;;  %v192_v56 = vsel %vm18_vm0, %v61_v36, 0.0  ;;  %v64_v57 = vld [vmem:[%s719_s0 + $0x160] sm:$0xff]  ;;  %v71_v23 = vld [vmem:[%s719_s0 + $0x198] sm:$0xff] }
  0x14   :  { %v102_v48 = vadd.f32 %v101_v37, %v100_v26  ;;  %v140_v49 = vadd.f32 %v139_v12, %v138_v38  ;;  %v159_v54 = vadd.f32 %v158_v34, %v157_v44  ;;  %v176_v55 = vadd.f32 %v175_v40, %v174_v46  ;;  %v72_v31 = vld [vmem:[%s719_s0 + $0x1a0] sm:$0xff]  ;;  %v73_v40 = vld [vmem:[%s719_s0 + $0x1a8] sm:$0xff] }
  0x15   :  { %v122_v53 = vrot.slane %v121_v43, 4  ;;  %v179_v59 = vsel %vm18_vm0, %v57_v41, 0.0  ;;  %v193_v60 = vadd.f32 %v192_v56, %v191_v51  ;;  %v194_v61 = vsel %vm18_vm0, %v62_v42, 0.0  ;;  %v76_v41 = vld [vmem:[%s719_s0 + $0x1c0] sm:$0xff]  ;;  %v77_v42 = vld [vmem:[%s719_s0 + $0x1c8] sm:$0xff] }
  0x16   :  { %v142_v58 = vadd.f32 %v141_v17, %v140_v49  ;;  %v161_v0 = vadd.f32 %v160_v39, %v159_v54  ;;  %v178_v1 = vadd.f32 %v177_v50, %v176_v55  ;;  %v196_v2 = vsel %vm18_vm0, %v63_v47, 0.0  ;;  %v70_v17 = vld [vmem:[%s719_s0 + $0x190] sm:$0xff]  ;;  %v79_v50 = vld [vmem:[%s719_s0 + $0x1d8] sm:$0xff] }
  0x17   :  { %v123_v63 = vadd.f32 %v122_v53, %v121_v43  ;;  %v103_v4 = vrot.slane %v102_v48, 2  ;;  %v181_v6 = vsel %vm18_vm0, %v58_v52, 0.0  ;;  %v195_v7 = vadd.f32 %v194_v61, %v193_v60  ;;  %v74_v49 = vld [vmem:[%s719_s0 + $0x1b0] sm:$0xff]  ;;  %v80_v60 = vld [vmem:[%s719_s0 + $0x1e0] sm:$0xff] }
  0x18   :  { %v143_v5 = vrot.slane %v142_v58, 4  ;;  %v163_v10 = vadd.f32 %v162_v45, %v161_v0  ;;  %v180_v11 = vadd.f32 %v179_v59, %v178_v1  ;;  %v198_v12 = vsel %vm18_vm0, %v64_v57, 0.0  ;;  %v78_v45 = vld [vmem:[%s719_s0 + $0x1d0] sm:$0xff]  ;;  %v75_v59 = vld [vmem:[%s719_s0 + $0x1b8] sm:$0xff] }
  0x19   :  { %v124_v9 = vrot.slane %v123_v63, 2  ;;  %v183_v15 = vsel %vm18_vm0, %v59_v62, 0.0  ;;  %v197_v16 = vadd.f32 %v196_v2, %v195_v7  ;;  %v200_v21 = vsel %vm18_vm0, %v65_v3, 0.0 }
  0x1a   :  { %v144_v18 = vadd.f32 %v143_v5, %v142_v58  ;;  %v164_v19 = vrot.slane %v163_v10, 4  ;;  %v182_v20 = vadd.f32 %v181_v6, %v180_v11  ;;  %v104_v24 = vadd.f32 %v103_v4, %v102_v48  ;;  %v81_v4 = vld [vmem:[%s719_s0 + $0x1e8] sm:$0xff] }
  0x1b   :  { %v199_v25 = vadd.f32 %v198_v12, %v197_v16  ;;  %v212_v26 = vsel %vm18_vm0, %v68_v8, 0.0  ;;  %v125_v27 = vadd.f32 %v124_v9, %v123_v63  ;;  %v202_v29 = vsel %vm18_vm0, %v66_v13, 0.0  ;;  %v82_v13 = vld [vmem:[%s719_s0 + $0x1f0] sm:$0xff] }
  0x1c   :  { %v184_v28 = vadd.f32 %v183_v15, %v182_v20  ;;  %v213_v30 = vsel %vm18_vm0, %v69_v14, 0.0  ;;  %v165_v32 = vadd.f32 %v164_v19, %v163_v10  ;;  %v215_v35 = vsel %vm18_vm0, %v70_v17, 0.0  ;;  %v83_v20 = vld [vmem:[%s719_s0 + $0x1f8] sm:$0xff] }
  0x1d   :  { %v201_v33 = vadd.f32 %v200_v21, %v199_v25  ;;  %v214_v34 = vadd.f32 %v213_v30, %v212_v26  ;;  %v145_v36 = vrot.slane %v144_v18, 2  ;;  %v204_v38 = vsel %vm18_vm0, %v67_v22, 0.0 }
  0x1e   :  { %v185_v37 = vrot.slane %v184_v28, 4  ;;  %v217_v39 = vsel %vm18_vm0, %v71_v23, 0.0  ;;  %v105_v46 = vrot.slane %v104_v24, 1  ;;  %v219_v48 = vsel %vm18_vm0, %v72_v31, 0.0 }
  0x1f   :  { %v203_v43 = vadd.f32 %v202_v29, %v201_v33  ;;  %v216_v44 = vadd.f32 %v215_v35, %v214_v34  ;;  %v126_v51 = vrot.slane %v125_v27, 1  ;;  %v166_v52 = vrot.slane %v165_v32, 2 }
  0x20   :  { %v186_v47 = vadd.f32 %v185_v37, %v184_v28  ;;  %v146_v55 = vadd.f32 %v145_v36, %v144_v18  ;;  %v221_v56 = vsel %vm18_vm0, %v73_v40, 0.0  ;;  %v233_v57 = vsel %vm18_vm0, %v76_v41, 0.0 }
  0x21   :  { %v205_v53 = vadd.f32 %v204_v38, %v203_v43  ;;  %v218_v54 = vadd.f32 %v217_v39, %v216_v44  ;;  %v234_v58 = vsel %vm18_vm0, %v77_v42, 0.0  ;;  %v236_v0 = vsel %vm18_vm0, %v78_v45, 0.0 }
  0x22   :  { %v235_v63 = vadd.f32 %v234_v58, %v233_v57  ;;  %v187_v1 = vrot.slane %v186_v47, 2  ;;  %v223_v2 = vsel %vm18_vm0, %v74_v49, 0.0  ;;  %v238_v3 = vsel %vm18_vm0, %v79_v50, 0.0  ;;  %v384_v58 = vld [vmem:[%s720_s2] ss:$0 sm:$0xff] }
  0x23   :  { %v206_v61 = vrot.slane %v205_v53, 4  ;;  %v220_v62 = vadd.f32 %v219_v48, %v218_v54  ;;  %v167_v5 = vadd.f32 %v166_v52, %v165_v32  ;;  %v106_v9 = vadd.f32 %v105_v46, %v104_v24 }
  0x24   :  { %v237_v8 = vadd.f32 %v236_v0, %v235_v63  ;;  %v147_v10 = vrot.slane %v146_v55, 1  ;;  %v225_v11 = vsel %vm18_vm0, %v75_v59, 0.0  ;;  %v240_v12 = vsel %vm18_vm0, %v80_v60, 0.0 }
  0x25   :  { %v207_v6 = vadd.f32 %v206_v61, %v205_v53  ;;  %v222_v7 = vadd.f32 %v221_v56, %v220_v62  ;;  %v127_v14 = vadd.f32 %v126_v51, %v125_v27  ;;  %v188_v18 = vadd.f32 %v187_v1, %v186_v47  ;;  %v84_v53 = vld [vmem:[#allocation2] sm:$0xff] }
  0x26   :  { %v239_v17 = vadd.f32 %v238_v3, %v237_v8  ;;  %v242_v19 = vsel %vm18_vm0, %v81_v4, 0.0  ;;  %v168_v21 = vrot.slane %v167_v5, 1  ;;  %v148_v24 = vadd.f32 %v147_v10, %v146_v55 }
  0x27   :  { %v208_v15 = vrot.slane %v207_v6, 2  ;;  %v224_v16 = vadd.f32 %v223_v2, %v222_v7  ;;  %v244_v25 = vsel %vm18_vm0, %v82_v13, 0.0  ;;  %v263_v29 = vsel %vm262_vm2, %v127_v14, %v106_v9 }
  0x28   :  { %v241_v23 = vadd.f32 %v240_v12, %v239_v17  ;;  %v189_v30 = vrot.slane %v188_v18, 1  ;;  %v246_v31 = vsel %vm18_vm0, %v83_v20, 0.0  ;;  %v169_v32 = vadd.f32 %v168_v21, %v167_v5 }
  0x29   :  { %v226_v22 = vadd.f32 %v225_v11, %v224_v16  ;;  %v209_v26 = vadd.f32 %v208_v15, %v207_v6  ;;  %v265_v35 = vsel %vm264_vm3, %v148_v24, %v263_v29  ;;  %vm274_vm8 = vcmask 1047559  }
  0x2a   :  { %v243_v28 = vadd.f32 %v242_v19, %v241_v23  ;;  %v190_v39 = vadd.f32 %v189_v30, %v188_v18  ;;  %v267_v42 = vsel %vm266_vm4, %v169_v32, %v265_v35  ;;  %vm367_vm9 = vcmask 15360  }
  0x2b   :  { %v227_v27 = vrot.slane %v226_v22, 4  ;;  %v210_v36 = vrot.slane %v209_v26, 1 }
  0x2c   :  { %v245_v34 = vadd.f32 %v244_v25, %v243_v28  ;;  %v269_v46 = vsel %vm268_vm5, %v190_v39, %v267_v42 }
  0x2d   :  { %v228_v33 = vadd.f32 %v227_v27, %v226_v22  ;;  %v211_v43 = vadd.f32 %v210_v36, %v209_v26 }
  0x2e   :  { %v247_v38 = vadd.f32 %v246_v31, %v245_v34 }
  0x2f   :  { %v229_v37 = vrot.slane %v228_v33, 2  ;;  %v271_v50 = vsel %vm270_vm6, %v211_v43, %v269_v46 }
  0x30   :  { %v248_v41 = vrot.slane %v247_v38, 4 }
  0x31   :  { %v230_v40 = vadd.f32 %v229_v37, %v228_v33 }
  0x32   :  { %v249_v45 = vadd.f32 %v248_v41, %v247_v38 }
  0x33   :  { %v231_v44 = vrot.slane %v230_v40, 1 }
  0x34   :  { %v250_v47 = vrot.slane %v249_v45, 2 }
  0x35   :  { %v232_v48 = vadd.f32 %v231_v44, %v230_v40 }
  0x36   :  { %v251_v49 = vadd.f32 %v250_v47, %v249_v45 }
  0x37   :  { %v273_v52 = vsel %vm272_vm7, %v232_v48, %v271_v50 }
  0x38   :  { %v252_v51 = vrot.slane %v251_v49, 1 }
  0x3a   :  { %v253_v54 = vadd.f32 %v252_v51, %v251_v49 }
  0x3c   :  { %v275_v55 = vsel %vm274_vm8, %v253_v54, %v273_v52 }
  0x3d   :  { %v277_v56 = vadd.f32 %v275_v55, %v84_v53 }
  0x3f   :  { %278 = vst.msk [vmem:[#allocation2] sm:$0xff] %vm18_vm0, %v277_v56 }
  0x46   :  { %v282_v57 = vld [vmem:[#allocation2] sm:$0xff] }
  0x47   :  { %400 = vmatmul.mubr.msk.f32.vlgmr.msra.gmra.mrb[0].mxu0 %vm18_vm0, %v282_v57 }
 0x11a   :  { %v363_v59 = vpop.f32.mrb[0].mxu0 }
 0x11b   :  { %v364_v60 = vadd.f32 %v384_v58, %v363_v59  ;;  %v401_v61 = vpop.f32.mrb[1].mxu0 }
 0x11d   :  { %v368_v62 = vsel %vm367_vm9, %v364_v60, -inf }
 0x11e   :  { %369 = vmax.xlane.f32.xlu0 %v368_v62 }
 0x1ab   :  { %v370_v63 = vpop.xlane.xlu0 %369 }
 0x1ac   :  { %v371_v0 = vsub.f32 %v364_v60, %v370_v63 }
 0x1ae   :  { %v372_v1 = vmul.f32 1.442695, %v371_v0 }
 0x1b0   :  { %411 = vpow2.f32 %v372_v1 }
 0x1ba   :  { %v412_v2 = vpop.eup %411 }
 0x1bb   :  { %v374_v3 = vsel %vm367_vm9, %v412_v2, 0.0 }
 0x1bc   :  { %375 = vadd.xlane.f32.xlu0 %v374_v3 }
 0x249   :  { %v376_v4 = vpop.xlane.xlu0 %375 }
 0x24a   :  { %413 = vrcp.f32 %v376_v4 }
 0x254   :  { %v414_v5 = vpop.eup %413 }
 0x255   :  { %v378_v6 = vmul.f32 %v414_v5, %v412_v2 }
 0x257   :  { %379 = vst.msk [vmem:[%s721_s3] sm:$0xff] %vm367_vm9, %v378_v6 }

</bundles_post_ra>
